<compile_context>
chip_gen: v7x
topology: tpu7x:2x2x1
jax: 0.10.0
libtpu: 0.0.40
codegen_flags: <defaults>
</compile_context>

<pallas_src>
import jax
import jax.numpy as jnp
from jax.experimental import pallas as pl
from jax.experimental.pallas import tpu as pltpu

LEAKY_SLOPE = 0.2
IN_EPS = 1e-5


def disc_block_kernel(p_ref, w_ref, b_ref, o_ref):
    # p_ref: (HW, KKCp) bf16 | w_ref: (KKCp, Coutp) bf16
    # b_ref: (1, Coutp) f32  | o_ref: (HW, Coutp) f32
    y = jnp.dot(p_ref[...], w_ref[...], preferred_element_type=jnp.float32)
    y = y + b_ref[...]                                     # bias, broadcast over spatial

    # InstanceNorm2d (affine=False, biased variance), one-pass stats per channel.
    inv_hw = 1.0 / y.shape[0]
    mean = jnp.sum(y, axis=0, keepdims=True) * inv_hw       # (1, Coutp)
    ex2 = jnp.sum(y * y, axis=0, keepdims=True) * inv_hw    # (1, Coutp)
    var = jnp.maximum(ex2 - mean * mean, 0.0)
    y = (y - mean) * jax.lax.rsqrt(var + IN_EPS)            # rsqrt -> EUP slot

    # LeakyReLU(0.2)
    o_ref[...] = jnp.where(y >= 0.0, y, LEAKY_SLOPE * y)


def _round_up(x, m):
    return (x + m - 1) // m * m


def im2col_reflect(x, k, stride):
    # x: (N, Cin, H, W) -> patches (N, Ho*Wo, Cin*K*K), reflect padding of 1.
    # Flatten order (ci, kh, kw) matches torch weight.reshape(Cout, -1).
    N, C, H, W = x.shape
    xp = jnp.pad(x, ((0, 0), (0, 0), (1, 1), (1, 1)), mode="reflect")
    Hp, Wp = H + 2, W + 2
    Ho = (Hp - k) // stride + 1
    Wo = (Wp - k) // stride + 1
    cols = []
    for kh in range(k):
        for kw in range(k):
            cols.append(
                xp[:, :,
                   kh:kh + stride * (Ho - 1) + 1:stride,
                   kw:kw + stride * (Wo - 1) + 1:stride])
    pat = jnp.stack(cols, axis=2)                    # (N, Cin, K*K, Ho, Wo)
    pat = pat.transpose(0, 3, 4, 1, 2)               # (N, Ho, Wo, Cin, K*K)
    pat = pat.reshape(N, Ho * Wo, C * k * k)
    return pat, Ho, Wo


def disc_block_forward(x, weight, bias, stride):
    # x: (N, Cin, H, W) f32; weight: (Cout, Cin, 4, 4) f32; bias: (Cout,) f32
    N = x.shape[0]
    Cout, Cin, k, _ = weight.shape
    patches, Ho, Wo = im2col_reflect(x, k, stride)
    HW, KKC = patches.shape[1], patches.shape[2]

    KKCp = _round_up(KKC, 128)     # lane-dense contraction dim
    Coutp = _round_up(Cout, 128)   # lane-dense output dim (unmasked stores)

    # bf16 MXU operands, zero-padded to lane-friendly shapes.
    p_bf = jnp.pad(patches, ((0, 0), (0, 0), (0, KKCp - KKC))).astype(jnp.bfloat16)
    w2d = weight.reshape(Cout, KKC).T                                    # (KKC, Cout)
    w_bf = jnp.pad(w2d, ((0, KKCp - KKC), (0, Coutp - Cout))).astype(jnp.bfloat16)
    b2d = jnp.pad(bias.reshape(1, Cout),
                  ((0, 0), (0, Coutp - Cout))).astype(jnp.float32)

    # Explicit scoped-VMEM budget from the actual block bytes (+headroom).
    block_bytes = (2 * HW * KKCp * 2        # patch block, double-buffered, bf16
                   + KKCp * Coutp * 2       # resident weight, bf16
                   + 2 * Coutp * 4          # bias
                   + 2 * HW * Coutp * 4)    # output block, double-buffered, f32
    vmem_limit = int(min(120 * 2**20, max(8 * 2**20, 4 * block_bytes)))

    out = pl.pallas_call(
        disc_block_kernel,
        out_shape=jax.ShapeDtypeStruct((N, HW, Coutp), jnp.float32),
        grid_spec=pltpu.PrefetchScalarGridSpec(
            num_scalar_prefetch=0,
            grid=(N,),
            in_specs=[
                # per-sample patch tile; batch dim squeezed -> 2-D ref in kernel
                pl.BlockSpec((pl.Squeezed(), HW, KKCp), lambda n: (n, 0, 0)),
                # weight/bias revisited (constant block index) -> stay resident
                pl.BlockSpec((KKCp, Coutp), lambda n: (0, 0)),
                pl.BlockSpec((1, Coutp), lambda n: (0, 0)),
            ],
            out_specs=pl.BlockSpec((pl.Squeezed(), HW, Coutp), lambda n: (n, 0, 0)),
        ),
        compiler_params=pltpu.CompilerParams(
            dimension_semantics=("parallel",),   # independent batch -> megacore sharding
            vmem_limit_bytes=vmem_limit),
    )(p_bf, w_bf, b2d)

    out = out[:, :, :Cout]   # drop zero-padded channels before reshaping
    # TODO(synk): keep NHWC between stacked DiscBlocks and fuse the next layer's
    # im2col; the NCHW transpose here exists only to match the PyTorch API.
    return out.reshape(N, Ho, Wo, Cout).transpose(0, 3, 1, 2)


def reference(x, weight, bias, stride):
    # pure-JAX f32 reference of the PyTorch forward for validation
    xp = jnp.pad(x, ((0, 0), (0, 0), (1, 1), (1, 1)), mode="reflect")
    y = jax.lax.conv_general_dilated(
        xp, weight, (stride, stride), "VALID",
        dimension_numbers=("NCHW", "OIHW", "NCHW"))
    y = y + bias.reshape(1, -1, 1, 1)
    mean = y.mean(axis=(2, 3), keepdims=True)
    var = ((y - mean) ** 2).mean(axis=(2, 3), keepdims=True)
    y = (y - mean) / jnp.sqrt(var + IN_EPS)
    return jnp.where(y >= 0, y, LEAKY_SLOPE * y)


if __name__ == "__main__":
    # DiscBlock(in_channels=4, out_channels=8, stride=2) on a (2, 4, 16, 16) input
    N, Cin, H, W = 2, 4, 16, 16
    Cout, K, stride = 8, 4, 2

    key = jax.random.PRNGKey(0)
    kx, kw, kb = jax.random.split(key, 3)
    x = jax.random.normal(kx, (N, Cin, H, W), dtype=jnp.float32)
    weight = 0.1 * jax.random.normal(kw, (Cout, Cin, K, K), dtype=jnp.float32)
    bias = 0.1 * jax.random.normal(kb, (Cout,), dtype=jnp.float32)

    out = jax.block_until_ready(disc_block_forward(x, weight, bias, stride))
    ref = jax.block_until_ready(reference(x, weight, bias, stride))

    assert out.shape == ref.shape == (N, Cout, H // stride, W // stride)
    # Tolerance accounts for bf16 matmul operands (f32 accumulation + f32 norm).
    assert jnp.allclose(out, ref, atol=5e-2, rtol=5e-2), \
        f"max abs diff {jnp.max(jnp.abs(out - ref))}"

    print("KERNEL_OK")
</pallas_src>

<mosaic_0001>
module attributes {stable_mosaic.version = 11 : i64} {
  func.func @disc_block_kernel(%arg0: i32, %arg1: memref<1x64x128xbf16, #tpu.memory_space<vmem>>, %arg2: memref<128x128xbf16, #tpu.memory_space<vmem>>, %arg3: memref<1x128xf32, #tpu.memory_space<vmem>>, %arg4: memref<1x64x128xf32, #tpu.memory_space<vmem>>) attributes {dimension_semantics = [#tpu.dimension_semantics<parallel>], iteration_bounds = array<i64: 2>, scalar_prefetch = 0 : i64, scratch_operands = 0 : i64, tpu.core_type = #tpu.core_type<tc>, window_params = [{transform_indices = @transform_0, window_bounds = array<i64: 1, 64, 128>}, {pipeline_mode = #tpu.pipeline_mode<synchronous>, transform_indices = @transform_1, window_bounds = array<i64: 128, 128>}, {pipeline_mode = #tpu.pipeline_mode<synchronous>, transform_indices = @transform_2, window_bounds = array<i64: 1, 128>}, {transform_indices = @transform_3, window_bounds = array<i64: 1, 64, 128>}]} {
    %c0 = arith.constant 0 : index
    %c0_0 = arith.constant 0 : index
    %c0_1 = arith.constant 0 : index
    %0 = vector.load %arg1[%c0, %c0_0, %c0_1] : memref<1x64x128xbf16, #tpu.memory_space<vmem>>, vector<1x64x128xbf16>
    %1 = vector.shape_cast %0 : vector<1x64x128xbf16> to vector<64x128xbf16>
    %c0_2 = arith.constant 0 : index
    %c0_3 = arith.constant 0 : index
    %2 = vector.load %arg2[%c0_2, %c0_3] : memref<128x128xbf16, #tpu.memory_space<vmem>>, vector<128x128xbf16>
    %cst = arith.constant dense<0.000000e+00> : vector<64x128xf32>
    %3 = tpu.matmul %1, %2, %cst {dimension_numbers = #tpu.dot_dimension_numbers<[1], [0], [0], [1], [0, 0, 1, 1], [], []>} : vector<64x128xbf16>, vector<128x128xbf16>, vector<64x128xf32> -> vector<64x128xf32>
    %c0_4 = arith.constant 0 : index
    %c0_5 = arith.constant 0 : index
    %4 = vector.load %arg3[%c0_4, %c0_5] : memref<1x128xf32, #tpu.memory_space<vmem>>, vector<1x128xf32>
    %5 = vector.broadcast %4 : vector<1x128xf32> to vector<64x128xf32>
    %6 = arith.addf %3, %5 : vector<64x128xf32>
    %cst_6 = arith.constant dense<0.000000e+00> : vector<128xf32>
    %7 = vector.multi_reduction <add>, %6, %cst_6 [0] : vector<64x128xf32> to vector<128xf32>
    %8 = vector.shape_cast %7 : vector<128xf32> to vector<1x128xf32>
    %cst_7 = arith.constant 1.562500e-02 : f32
    %9 = vector.broadcast %cst_7 : f32 to vector<1x128xf32>
    %10 = arith.mulf %8, %9 : vector<1x128xf32>
    %11 = arith.mulf %6, %6 : vector<64x128xf32>
    %cst_8 = arith.constant dense<0.000000e+00> : vector<128xf32>
    %12 = vector.multi_reduction <add>, %11, %cst_8 [0] : vector<64x128xf32> to vector<128xf32>
    %13 = vector.shape_cast %12 : vector<128xf32> to vector<1x128xf32>
    %cst_9 = arith.constant 1.562500e-02 : f32
    %14 = vector.broadcast %cst_9 : f32 to vector<1x128xf32>
    %15 = arith.mulf %13, %14 : vector<1x128xf32>
    %16 = arith.mulf %10, %10 : vector<1x128xf32>
    %17 = arith.subf %15, %16 : vector<1x128xf32>
    %cst_10 = arith.constant 0.000000e+00 : f32
    %18 = vector.broadcast %cst_10 : f32 to vector<1x128xf32>
    %19 = arith.maximumf %17, %18 : vector<1x128xf32>
    %20 = vector.broadcast %10 : vector<1x128xf32> to vector<64x128xf32>
    %21 = arith.subf %6, %20 : vector<64x128xf32>
    %cst_11 = arith.constant 9.99999974E-6 : f32
    %22 = vector.broadcast %cst_11 : f32 to vector<1x128xf32>
    %23 = arith.addf %19, %22 : vector<1x128xf32>
    %24 = math.rsqrt %23 : vector<1x128xf32>
    %25 = vector.broadcast %24 : vector<1x128xf32> to vector<64x128xf32>
    %26 = arith.mulf %21, %25 : vector<64x128xf32>
    %cst_12 = arith.constant 0.000000e+00 : f32
    %27 = vector.broadcast %cst_12 : f32 to vector<64x128xf32>
    %28 = arith.cmpf oge, %26, %27 : vector<64x128xf32>
    %cst_13 = arith.constant 2.000000e-01 : f32
    %29 = vector.broadcast %cst_13 : f32 to vector<64x128xf32>
    %30 = arith.mulf %29, %26 : vector<64x128xf32>
    %31 = arith.select %28, %26, %30 : vector<64x128xi1>, vector<64x128xf32>
    %c0_14 = arith.constant 0 : index
    %c0_15 = arith.constant 0 : index
    %c0_16 = arith.constant 0 : index
    %32 = vector.load %arg4[%c0_14, %c0_15, %c0_16] : memref<1x64x128xf32, #tpu.memory_space<vmem>>, vector<1x64x128xf32>
    %33 = vector.shape_cast %32 : vector<1x64x128xf32> to vector<64x128xf32>
    %34 = vector.shape_cast %31 : vector<64x128xf32> to vector<1x64x128xf32>
    tpu.vector_store %arg4[%c0_14, %c0_15, %c0_16], %34 {strides = array<i32>} : memref<1x64x128xf32, #tpu.memory_space<vmem>>, vector<1x64x128xf32>,
    return
  }
  func.func @transform_0(%arg0: i32) -> (i32, i32, i32) {
    %c0_i32 = arith.constant 0 : i32
    %c0_i32_0 = arith.constant 0 : i32
    %c0_i32_1 = arith.constant 0 : i32
    return %arg0, %c0_i32, %c0_i32_0 : i32, i32, i32
  }
  func.func @transform_1(%arg0: i32) -> (i32, i32) {
    %c0_i32 = arith.constant 0 : i32
    %c0_i32_0 = arith.constant 0 : i32
    %c0_i32_1 = arith.constant 0 : i32
    return %c0_i32, %c0_i32_0 : i32, i32
  }
  func.func @transform_2(%arg0: i32) -> (i32, i32) {
    %c0_i32 = arith.constant 0 : i32
    %c0_i32_0 = arith.constant 0 : i32
    %c0_i32_1 = arith.constant 0 : i32
    return %c0_i32, %c0_i32_0 : i32, i32
  }
  func.func @transform_3(%arg0: i32) -> (i32, i32, i32) {
    %c0_i32 = arith.constant 0 : i32
    %c0_i32_0 = arith.constant 0 : i32
    %c0_i32_1 = arith.constant 0 : i32
    return %arg0, %c0_i32, %c0_i32_0 : i32, i32, i32
  }
}

</mosaic_0001>

<bundles_post_ra>
// kernel: tpu_custom_call.1
= control target key start
LH: loop header
LB: loop body
LE: loop exit
PB: predicated region body
PF: predicated region fallthrough
CT: control target
= control target key end

     0   :  { %8 = vsyncpa [#allocation3], 0  ;;  %s1104_s0 = inlined_call_operand.hbm [shape: bf16[2,64,128], index: 0, kind: input, shape index: {}]   ;;  %s1105_s1 = inlined_call_operand.hbm [shape: bf16[128,128], index: 1, kind: input, shape index: {}]   ;;  %s1106_s2 = inlined_call_operand.vmem [shape: f32[1,128], index: 2, kind: input, shape index: {}]   ;;  %s1107_s3 = inlined_call_operand.hbm [shape: f32[2,64,128], index: 3, kind: output, shape index: {}]  }
   0x1   :  { %10 = vsyncpa [#allocation3 + $0x1], 0 }
   0x2   :  { %11 = vsyncpa [#allocation6], 0 }
   0x3   :  { %12 = vsyncpa [#allocation4], 0 }
   0x4   :  { %14 = vsyncpa [#allocation4 + $0x1], 0  ;;  %s874_s12 = smov 0   ;;  %s876_s13 = smov 0  }
   0x5   :  { %s878_s14 = smov 0   ;;  %s880_s15 = smov 0  }
   0x6 LB: > { %s895_s16 = sadd.s32 4294967295, %s845_s15   ;;  %s559_s17 = sadd.s32 4294967294, %s845_s15   ;;  %s845_s15 = sphi %s880_s15, %s1127_s15   ;;  %s841_s14 = sphi %s878_s14, %s1126_s14   ;;  %s837_s13 = sphi %s876_s13, %s1125_s13   ;;  %s833_s12 = sphi %s874_s12, %s1124_s12  }
   0x7   : > { %p40_p0 = scmp.ne.s32.totalorder %s837_s13, %s833_s12  ;;  %p1108_p1 = scmp.eq.s32.totalorder %s895_s16, 0 }
   0x8   : > { %p112_p3 = scmp.eq.s32.totalorder %s559_s17, 1  ;;  %p560_p5 = scmp.ge.s32.totalorder %s845_s15, 1 }
   0x9   : > { %p904_p4 = por %p1108_p1, %p40_p0  ;;  %p119_p7 = scmp.lt.s32.totalorder %s845_s15, 3 }
   0xa   : > { %p909_p6 = por %p112_p3, %p40_p0  ;;  %s847_s21 = smov [#allocation5]  }
   0xb   : > { %s1111_s18 = scalar_select %p904_p4, 1, 0 }
   0xc   : > { %s1112_s19 = scalar_select %p909_p6, 1, 0 }
   0xd   : > { %p914_p8 = pnand %p560_p5, %p119_p7  ;;  %s131_s22 = sshll.u32 %s847_s21, 4  ;;  %s918_s22 = int_to_ptr.vmem [resolvable:$true] %s131_s22 }
   0xe   : > { %s930_s24 = sadd.s32 1, %s845_s15   ;;  %s27_s25 = sadd.s32 1, %s841_s14 }
   0xf   : > { %s1113_s20 = scalar_select %p914_p8, 1, 0 }
  0x10   : > { %p650_p9 = pneg %p914_p8  ;;  %s24_s26 = ssub.s32 %s845_s15, %s930_s24 }
  0x11   : > { %s717_s29 = scalar_lea.hbm %s1105_s1, 1024 }
  0x12   : > { %p925_p11 = pnand %p650_p9, %p1108_p1  ;;  %p718_p12 = scmp.ne.s32.totalorder %s1105_s1, %s717_s29 }
  0x13   : > { %p724_p5 = scmp.lt.u32.totalorder %s717_s29, %s1105_s1 }
  0x14   : > { %p719_p13 = pneg %p925_p11 }
  0x16   : > { %p720_p0 = pnand %p719_p13, %p718_p12 }
  0x18   : > { %p721_p3 = pneg %p720_p0 }
  0x1a   : > { %p726_p7 = pnand %p724_p5, %p721_p3 }
  0x1c   : > { %729 = shalt.err (!%p726_p7)
}
  0x1d   : > { %s730_s7 = scalar_lea.vmem %s918_s22, 1024  ;;  %p738_p2 = scmp.lt.s32.totalorder %s918_s22, %s918_s22 }
  0x1e   : > { %p731_p9 = scmp.ne.s32.totalorder %s918_s22, %s730_s7  ;;  %p739_p6 = scmp.lt.s32.totalorder %s730_s7, %s730_s7 }
  0x20   : > { %p733_p10 = pnand %p731_p9, %p719_p13  ;;  %p740_p4 = por %p739_p6, %p738_p2 }
  0x22   : > { %p734_p1 = pneg %p733_p10 }
  0x24   : > { %p741_p8 = pnand %p740_p4, %p734_p1 }
  0x26   : > { %744 = shalt.err (!%p741_p8)
}
  0x27   : > { %s848_s8 = smov 64   ;;  %s849_s9 = smov 4  }
  0x28   : > { %653 = dma.hbm_to_vmem [thread:$0]  (!%p925_p11), %s1105_s1, 1024, %s918_s22, [#allocation6], %s848_s8, %s848_s8, %s849_s9  }
  0x29   : > { %p25_p1 = scmp.eq.s32.totalorder %s24_s26, 0  ;;  %p34_p2 = scmp.ne.s32.totalorder %s841_s14, %s837_s13 }
  0x2a   : > { %p35_p4 = scmp.eq.s32.totalorder %s845_s15, 0  ;;  %p663_p6 = scmp.lt.s32.totalorder %s845_s15, 2 }
  0x2b   : > { %s964_s17 = scalar_select %p25_p1, %s841_s14, %s27_s25  }
  0x2c   : > { %p36_p8 = por %p35_p4, %p34_p2  ;;  %p1115_p10 = scmp.eq.s32.totalorder %s895_s16, 1 }
  0x2d   : > { %s148_s23 = sand.u32 1, %s841_s14   ;;  %s588_s27 = sshll.u32 %s845_s15, 9 }
  0x2e   : > { %p968_p12 = por %p1115_p10, %p34_p2  ;;  %s563_s28 = sshll.u32 %s148_s23, 5 }
  0x2f   : > { %s977_s4 = scalar_lea.hbm %s1104_s0, %s588_s27  ;;  %s152_s22 = scalar_lea.vmem [#allocation2], %s563_s28 }
  0x30   : > { %s159_s25 = sshll.u32 %s152_s22, 4  ;;  %p979_p11 = pnand %p663_p6, %p36_p8  ;;  %s983_s25 = int_to_ptr.vmem [resolvable:$true] %s159_s25 }
  0x31   : > { %s985_s5 = scalar_lea.sflag [#allocation3], %s148_s23  ;;  %s745_s6 = scalar_lea.hbm %s977_s4, 512 }
  0x32   : > { %p746_p13 = scmp.ne.s32.totalorder %s977_s4, %s745_s6  ;;  %p747_p0 = pneg %p979_p11 }
  0x33   : > { %s750_s11 = scalar_lea.hbm %s1104_s0, 1024  ;;  %p751_p7 = scmp.lt.u32.totalorder %s977_s4, %s1104_s0 }
  0x34   : > { %p748_p3 = pnand %p747_p0, %p746_p13  ;;  %p752_p9 = scmp.lt.u32.totalorder %s750_s11, %s745_s6 }
  0x35   : > { %p754_p2 = scmp.lt.u32.totalorder %s745_s6, %s977_s4 }
  0x36   : > { %p749_p5 = pneg %p748_p3  ;;  %p753_p1 = por %p752_p9, %p751_p7 }
  0x38   : > { %p755_p4 = por %p754_p2, %p753_p1 }
  0x3a   : > { %p756_p6 = pnand %p755_p4, %p749_p5 }
  0x3c   : > { %759 = shalt.err (!%p756_p6)
}
  0x3d   : > { %s760_s23 = scalar_lea.vmem %s983_s25, 512  ;;  %s850_s29 = smov [#allocation2]  }
  0x3e   : > { %p761_p8 = scmp.ne.s32.totalorder %s983_s25, %s760_s23  ;;  %s765_s30 = sshll.u32 %s850_s29, 4  ;;  %s766_s30 = int_to_ptr.vmem [resolvable:$false] %s765_s30 }
  0x3f   : > { %s767_s22 = scalar_lea.vmem %s766_s30, 1024  ;;  %p768_p3 = scmp.lt.s32.totalorder %s983_s25, %s766_s30 }
  0x40   : > { %p763_p10 = pnand %p761_p8, %p747_p0  ;;  %p769_p7 = scmp.lt.s32.totalorder %s767_s22, %s760_s23 }
  0x42   : > { %p764_p13 = pneg %p763_p10  ;;  %p770_p9 = por %p769_p7, %p768_p3 }
  0x44   : > { %p771_p1 = pnand %p770_p9, %p764_p13 }
  0x46   : > { %774 = shalt.err (!%p771_p1)
}
  0x47   : > { %657 = dma.hbm_to_vmem [thread:$0]  (!%p979_p11), %s977_s4, 512, %s983_s25, %s985_s5, %s848_s8, %s848_s8, %s849_s9  }
  0x48   : > { %p1118_p0 = scmp.ne.s32.totalorder %s1113_s20, 0 }
  0x49   : > { %s1019_s6 = sand.u32 (!%p1118_p0), 1, %s837_s13   ;;  %p1119_p5 = scmp.ne.s32.totalorder (!%p1118_p0), %s1111_s18, 0 }
  0x4a   : > { %171 = sbr.rel (%p1118_p0) target bundleno = 407 (0x197), region = 32  ;;  %s567_s7 = sshll.u32 (!%p1118_p0), %s1019_s6, 5 }
  0x4b   : > { %s174_s10 = scalar_lea.sflag (!%p1118_p0), [#allocation3], %s1019_s6  ;;  %s1023_s11 = scalar_lea.vmem (!%p1118_p0), [#allocation2], %s567_s7 }
  0x51   : > { %820 = dma.done.wait (%p1119_p5), %s174_s10, 512  }
  0x52   : > { %822 = vsyncadd (%p1119_p5), %s174_s10, 4294966784  ;;  %p1120_p11 = scmp.eq.s32.totalorder %s895_s16, 0 }
  0x54   : > { %824 = dma.done.wait (%p1120_p11), [#allocation6], 1024   ;;  %p1121_p2 = pmov %p1120_p11 }
  0x55   : > { %v703_v0 = vld [vmem:[#allocation5] sm:$0xff]   ;;  %v704_v1 = vld [vmem:[#allocation5 + $0x8] sm:$0xff]   ;;  %v705_v2 = vld [vmem:[#allocation5 + $0x10] sm:$0xff]   ;;  %s569_s8 = sshll.u32 %s1019_s6, 6  ;;  %s589_s9 = sshll.u32 %s895_s16, 10 }
  0x56   : > { %826 = vsyncadd (%p1121_p2), [#allocation6], 4294966272  ;;  %602 = vmatprep.subr.bf16.mxu0 %v703_v0  ;;  %626 = vmatprep.subr.bf16.mxu1 %v703_v0  ;;  %v706_v3 = vld [vmem:[#allocation5 + $0x18] sm:$0xff]   ;;  %v711_v4 = vld [vmem:[%s1023_s11] sm:$0xff]   ;;  %s203_s4 = scalar_lea.vmem [#allocation7], %s569_s8  ;;  %s1053_s16 = scalar_lea.hbm %s1107_s3, %s589_s9 }
  0x57   : > { %603 = vmatpush3.bf16.msra.mxu0 %v703_v0  ;;  %634 = vmatpush3.bf16.msra.mxu1 %v703_v0  ;;  %v713_v5 = vld [vmem:[%s1023_s11 + $0x10] sm:$0xff]   ;;  %v707_v6 = vld [vmem:[#allocation5 + $0x20] sm:$0xff]   ;;  %v708_v7 = vld [vmem:[#allocation5 + $0x28] sm:$0xff]   ;;  %s476_s25 = sshll.u32 %s203_s4, 4  ;;  %s463_s27 = scalar_lea.sflag [#allocation4], %s1019_s6  ;;  %s1055_s25 = int_to_ptr.vmem [resolvable:$true] %s476_s25 }
  0x58   : > { %604 = vmatprep.subr.bf16.mxu0 %v704_v1  ;;  %627 = vmatprep.subr.bf16.mxu1 %v704_v1  ;;  %v709_v8 = vld [vmem:[#allocation5 + $0x30] sm:$0xff]   ;;  %v710_v9 = vld [vmem:[#allocation5 + $0x38] sm:$0xff]   ;;  %v712_v10 = vld [vmem:[%s1023_s11 + $0x8] sm:$0xff]   ;;  %s775_s28 = scalar_lea.vmem %s1055_s25, 1024  ;;  %s851_s23 = smov [#allocation7]  }
  0x59   : > { %618 = vmatprep.mubr.bf16.mxu0 %v711_v4  ;;  %622 = vmatprep.mubr.bf16.mxu1 %v713_v5  ;;  %v714_v11 = vld [vmem:[%s1023_s11 + $0x18] sm:$0xff]   ;;  %v570_v12 = vld [vmem:[%s1106_s2] ss:$0 sm:$0xff]  ;;  %p776_p4 = scmp.ne.s32.totalorder %s1055_s25, %s775_s28  ;;  %s779_s29 = sshll.u32 %s851_s23, 4  ;;  %s780_s29 = int_to_ptr.vmem [resolvable:$false] %s779_s29 }
  0x5a   : > { %s781_s30 = scalar_lea.vmem %s780_s29, 2048  ;;  %p782_p10 = scmp.lt.s32.totalorder %s1055_s25, %s780_s29 }
  0x5b   : > { %605 = vmatpush3.bf16.msra.mxu0 %v704_v1  ;;  %635 = vmatpush3.bf16.msra.mxu1 %v704_v1  ;;  %p777_p6 = pnand %p776_p4, %p968_p12  ;;  %p783_p13 = scmp.lt.s32.totalorder %s781_s30, %s775_s28 }
  0x5c   : > { %606 = vmatprep.subr.bf16.mxu0 %v705_v2  ;;  %628 = vmatprep.subr.bf16.mxu1 %v705_v2 }
  0x5d   : > { %p778_p8 = pneg %p777_p6  ;;  %p784_p3 = por %p783_p13, %p782_p10 }
  0x5f   : > { %607 = vmatpush3.bf16.msra.mxu0 %v705_v2  ;;  %636 = vmatpush3.bf16.msra.mxu1 %v705_v2  ;;  %p785_p7 = pnand %p784_p3, %p778_p8 }
  0x60   : > { %608 = vmatprep.subr.bf16.mxu0 %v706_v3  ;;  %629 = vmatprep.subr.bf16.mxu1 %v706_v3 }
  0x63   : > { %609 = vmatpush3.bf16.msra.mxu0 %v706_v3  ;;  %637 = vmatpush3.bf16.msra.mxu1 %v706_v3 }
  0x64   : > { %610 = vmatprep.subr.bf16.mxu0 %v707_v6  ;;  %630 = vmatprep.subr.bf16.mxu1 %v707_v6 }
  0x67   : > { %611 = vmatpush3.bf16.msra.mxu0 %v707_v6  ;;  %638 = vmatpush3.bf16.msra.mxu1 %v707_v6 }
  0x68   : > { %612 = vmatprep.subr.bf16.mxu0 %v708_v7  ;;  %631 = vmatprep.subr.bf16.mxu1 %v708_v7 }
  0x6b   : > { %613 = vmatpush3.bf16.msra.mxu0 %v708_v7  ;;  %639 = vmatpush3.bf16.msra.mxu1 %v708_v7 }
  0x6c   : > { %614 = vmatprep.subr.bf16.mxu0 %v709_v8  ;;  %632 = vmatprep.subr.bf16.mxu1 %v709_v8 }
  0x6f   : > { %615 = vmatpush3.bf16.msra.mxu0 %v709_v8  ;;  %640 = vmatpush3.bf16.msra.mxu1 %v709_v8 }
  0x70   : > { %616 = vmatprep.subr.bf16.mxu0 %v710_v9  ;;  %633 = vmatprep.subr.bf16.mxu1 %v710_v9 }
  0x73   : > { %617 = vmatpush3.bf16.msra.mxu0 %v710_v9  ;;  %641 = vmatpush3.bf16.msra.mxu1 %v710_v9 }
  0x76   : > { %619 = vmatmul.mubr.bf16.vlgmr.msra.gmra.mrb[0].mxu0 %v712_v10  ;;  %623 = vmatmul.mubr.bf16.vlgmr.msra.gmra.mrb[0].mxu1 %v714_v11 }
 0x149   : > { %v620_v13 = vpop.f32.mrb[0].mxu0  ;;  %v624_v14 = vpop.f32.mrb[0].mxu1 }
 0x14a   : > { %v342_v15 = vpop.f32.mrb[1].mxu0  ;;  %v358_v16 = vpop.f32.mrb[1].mxu1  ;;  %v351_v22 = vadd.f32 %v620_v13, %v570_v12  ;;  %v367_v37 = vadd.f32 %v624_v14, %v570_v12 }
 0x14b   : > { %v1040_v17 = vadd.f32 %v570_v12, %v342_v15  ;;  %v621_v18 = vpop.f32.mrb[2].mxu0  ;;  %v625_v19 = vpop.f32.mrb[2].mxu1  ;;  %v359_v24 = vadd.f32 %v570_v12, %v358_v16 }
 0x14c   : > { %v345_v20 = vpop.f32.mrb[3].mxu0  ;;  %v361_v21 = vpop.f32.mrb[3].mxu1  ;;  %v354_v26 = vadd.f32 %v621_v18, %v570_v12  ;;  %v389_v29 = vmul.f32 %v351_v22, %v351_v22  ;;  %v370_v41 = vadd.f32 %v625_v19, %v570_v12  ;;  %v393_v44 = vmul.f32 %v367_v37, %v367_v37 }
 0x14d   : > { %v346_v23 = vadd.f32 %v570_v12, %v345_v20  ;;  %v387_v25 = vmul.f32 %v1040_v17, %v1040_v17  ;;  %v391_v32 = vmul.f32 %v359_v24, %v359_v24  ;;  %v362_v36 = vadd.f32 %v570_v12, %v361_v21 }
 0x14e   : > { %v390_v33 = vmul.f32 %v354_v26, %v354_v26  ;;  %v394_v47 = vmul.f32 %v370_v41, %v370_v41 }
 0x14f   : > { %v373_v27 = vadd.f32 %v346_v23, %v1040_v17  ;;  %v388_v28 = vmul.f32 %v346_v23, %v346_v23  ;;  %v392_v43 = vmul.f32 %v362_v36, %v362_v36 }
 0x151   : > { %v374_v30 = vadd.f32 %v373_v27, %v351_v22  ;;  %v395_v31 = vadd.f32 %v388_v28, %v387_v25 }
 0x153   : > { %v396_v34 = vadd.f32 %v395_v31, %v389_v29  ;;  %v375_v35 = vadd.f32 %v374_v30, %v354_v26 }
 0x155   : > { %v376_v38 = vadd.f32 %v375_v35, %v359_v24  ;;  %v397_v39 = vadd.f32 %v396_v34, %v390_v33 }
 0x157   : > { %v398_v40 = vadd.f32 %v397_v39, %v391_v32  ;;  %v377_v42 = vadd.f32 %v376_v38, %v362_v36 }
 0x159   : > { %v378_v45 = vadd.f32 %v377_v42, %v367_v37  ;;  %v399_v46 = vadd.f32 %v398_v40, %v392_v43 }
 0x15b   : > { %v379_v48 = vadd.f32 %v378_v45, %v370_v41  ;;  %v400_v49 = vadd.f32 %v399_v46, %v393_v44 }
 0x15d   : > { %v380_v50 = vrot.slane %v379_v48, 4  ;;  %v401_v51 = vadd.f32 %v400_v49, %v394_v47 }
 0x15f   : > { %v381_v52 = vadd.f32 %v380_v50, %v379_v48  ;;  %v402_v53 = vrot.slane %v401_v51, 4 }
 0x161   : > { %v382_v54 = vrot.slane %v381_v52, 2  ;;  %v403_v55 = vadd.f32 %v402_v53, %v401_v51 }
 0x163   : > { %v383_v56 = vadd.f32 %v382_v54, %v381_v52  ;;  %v404_v57 = vrot.slane %v403_v55, 2 }
 0x165   : > { %v384_v58 = vrot.slane %v383_v56, 1  ;;  %v405_v59 = vadd.f32 %v404_v57, %v403_v55 }
 0x167   : > { %v385_v60 = vadd.f32 %v384_v58, %v383_v56  ;;  %v406_v61 = vrot.slane %v405_v59, 1 }
 0x169   : > { %v386_v62 = vmul.f32 0.015625, %v385_v60  ;;  %v407_v63 = vadd.f32 %v406_v61, %v405_v59 }
 0x16b   : > { %v408_v0 = vmul.f32 0.015625, %v407_v63  ;;  %v409_v1 = vmul.f32 %v386_v62, %v386_v62  ;;  %v412_v2 = vsub.f32 %v1040_v17, %v386_v62  ;;  %v413_v3 = vsub.f32 %v346_v23, %v386_v62 }
 0x16c   : > { %v414_v4 = vsub.f32 %v351_v22, %v386_v62  ;;  %v415_v5 = vsub.f32 %v354_v26, %v386_v62  ;;  %v416_v6 = vsub.f32 %v359_v24, %v386_v62  ;;  %v417_v7 = vsub.f32 %v362_v36, %v386_v62 }
 0x16d   : > { %v410_v8 = vsub.f32 %v408_v0, %v409_v1  ;;  %v418_v9 = vsub.f32 %v367_v37, %v386_v62  ;;  %v419_v10 = vsub.f32 %v370_v41, %v386_v62 }
 0x16f   : > { %v411_v11 = vmax.f32 %v410_v8, 0.0 }
 0x171   : > { %v420_v12 = vadd.f32 1e-05, %v411_v11 }
 0x173   : > { %715 = vrsqrt.f32 %v420_v12 }
 0x17d   : > { %v716_v13 = vpop.eup %715 }
 0x17e   : > { %v427_v14 = vmul.f32 %v716_v13, %v417_v7  ;;  %v422_v15 = vmul.f32 %v716_v13, %v412_v2  ;;  %v423_v16 = vmul.f32 %v716_v13, %v413_v3  ;;  %v424_v18 = vmul.f32 %v716_v13, %v414_v4 }
 0x17f   : > { %v425_v19 = vmul.f32 %v716_v13, %v415_v5  ;;  %v426_v17 = vmul.f32 %v716_v13, %v416_v6  ;;  %v428_v20 = vmul.f32 %v716_v13, %v418_v9  ;;  %v429_v21 = vmul.f32 %v716_v13, %v419_v10 }
 0x180   : > { %vm435_vm0 = vcmp.ge.f32.partialorder %v427_v14, 0.0  ;;  %v443_v22 = vmul.f32 0.2, %v427_v14  ;;  %vm430_vm1 = vcmp.ge.f32.partialorder %v422_v15, 0.0  ;;  %vm431_vm2 = vcmp.ge.f32.partialorder %v423_v16, 0.0 }
 0x181   : > { %vm432_vm3 = vcmp.ge.f32.partialorder %v424_v18, 0.0  ;;  %vm433_vm4 = vcmp.ge.f32.partialorder %v425_v19, 0.0  ;;  %vm434_vm5 = vcmp.ge.f32.partialorder %v426_v17, 0.0  ;;  %vm436_vm6 = vcmp.ge.f32.partialorder %v428_v20, 0.0 }
 0x182   : > { %v451_v23 = vsel %vm435_vm0, %v427_v14, %v443_v22  ;;  %vm437_vm7 = vcmp.ge.f32.partialorder %v429_v21, 0.0  ;;  %v438_v24 = vmul.f32 0.2, %v422_v15  ;;  %v439_v25 = vmul.f32 0.2, %v423_v16 }
 0x183   : > { %459 = vst [vmem:[%s203_s4 + $0x28] sm:$0xff] %v451_v23  ;;  %v440_v26 = vmul.f32 0.2, %v424_v18  ;;  %v441_v27 = vmul.f32 0.2, %v425_v19 }
 0x184   : > { %v442_v28 = vmul.f32 0.2, %v426_v17  ;;  %v444_v29 = vmul.f32 0.2, %v428_v20  ;;  %v445_v30 = vmul.f32 0.2, %v429_v21  ;;  %v446_v31 = vsel %vm430_vm1, %v422_v15, %v438_v24 }
 0x185   : > { %v447_v32 = vsel %vm431_vm2, %v423_v16, %v439_v25  ;;  %v448_v33 = vsel %vm432_vm3, %v424_v18, %v440_v26  ;;  %v449_v34 = vsel %vm433_vm4, %v425_v19, %v441_v27  ;;  %454 = vst [vmem:[%s203_s4] sm:$0xff] %v446_v31 }
 0x186   : > { %v450_v35 = vsel %vm434_vm5, %v426_v17, %v442_v28  ;;  %455 = vst [vmem:[%s203_s4 + $0x8] sm:$0xff] %v447_v32  ;;  %v452_v36 = vsel %vm436_vm6, %v428_v20, %v444_v29  ;;  %v453_v37 = vsel %vm437_vm7, %v429_v21, %v445_v30  ;;  %456 = vst [vmem:[%s203_s4 + $0x10] sm:$0xff] %v448_v33 }
 0x187   : > { %457 = vst [vmem:[%s203_s4 + $0x18] sm:$0xff] %v449_v34  ;;  %458 = vst [vmem:[%s203_s4 + $0x20] sm:$0xff] %v450_v35 }
 0x188   : > { %460 = vst [vmem:[%s203_s4 + $0x30] sm:$0xff] %v452_v36  ;;  %461 = vst [vmem:[%s203_s4 + $0x38] sm:$0xff] %v453_v37 }
 0x189   : > { %788 = shalt.err (!%p785_p7)
}
 0x18a   : > { %s789_s22 = scalar_lea.hbm %s1053_s16, 1024  ;;  %s793_s11 = scalar_lea.hbm %s1107_s3, 2048 }
 0x18b   : > { %p790_p9 = scmp.ne.s32.totalorder %s1053_s16, %s789_s22  ;;  %p794_p5 = scmp.lt.u32.totalorder %s1053_s16, %s1107_s3 }
 0x18c   : > { %p795_p11 = scmp.lt.u32.totalorder %s793_s11, %s789_s22  ;;  %p797_p4 = scmp.lt.u32.totalorder %s789_s22, %s1053_s16 }
 0x18d   : > { %p791_p1 = pnand %p790_p9, %p968_p12 }
 0x18e   : > { %p796_p2 = por %p795_p11, %p794_p5 }
 0x18f   : > { %p792_p0 = pneg %p791_p1 }
 0x190   : > { %p798_p6 = por %p797_p4, %p796_p2 }
 0x192   : > { %p799_p8 = pnand %p798_p6, %p792_p0 }
 0x194   : > { %802 = shalt.err (!%p799_p8)
}
 0x195   : > { %s852_s8 = smov 128   ;;  %s853_s9 = smov 8  }
 0x196   : > { %648 = dma.vmem_to_hbm [thread:$0]  (%p968_p12), %s1055_s25, 1024, %s1053_s16, %s463_s27, %s852_s8, %s852_s8, %s853_s9  }
 0x197 PF: > { %s491_s4 = sand.u32 1, %s833_s12   ;;  %p1122_p10 = scmp.ne.s32.totalorder %s1112_s19, 0 }
 0x198   : > { %p1123_p13 = scmp.ge.s32.totalorder %s845_s15, 2  ;;  %s492_s26 = scalar_lea.sflag [#allocation4], %s491_s4 }
 0x19a   : > { %p659_p3 = pnand %p1123_p13, %p1122_p10 }
 0x19c   : > { %828 = dma.done.wait (!%p659_p3), %s492_s26, 1024  }
 0x19d   : > { %830 = vsyncadd (!%p659_p3), %s492_s26, 4294966272  ;;  %p17_p7 = scmp.ge.s32.totalorder %s930_s24, 4   ;;  %s1124_s12 = smov %s837_s13 }
 0x19e   : > { %s1125_s13 = smov %s841_s14  ;;  %s1126_s14 = smov %s964_s17 }
 0x19f   : > { %s1127_s15 = smov %s930_s24  ;;  %19 = sbr.rel (!%p17_p7) target bundleno = 6 (0x6), region = 81 }
 0x1a6   :  { %497 = vsyncpa [#allocation3], 1 }
 0x1a7   :  { %499 = vsyncpa [#allocation3 + $0x1], 1 }
 0x1a8   :  { %500 = vsyncpa [#allocation6], 1 }
 0x1a9   :  { %501 = vsyncpa [#allocation4], 1 }
 0x1aa   :  { %503 = vsyncpa [#allocation4 + $0x1], 1 }

</bundles_post_ra>
